<compile_context>
chip_gen: v6e
topology: v6e:2x2x1
jax: 0.10.0
libtpu: 0.0.40
codegen_flags: <defaults>
</compile_context>

<pallas_src>
import functools

import jax
import jax.numpy as jnp
from jax.experimental import pallas as pl
from jax.experimental.pallas import tpu as pltpu


_COMPUTE_DTYPE = jnp.bfloat16          # MXU operand + activation dtype
_TM_CANDIDATES = (1024, 512, 256, 128, 64, 32, 16)


def _round_up(x, m):
    return -(-x // m) * m


def _choose_tiling(m):
    """Pick (TM, M_pad).  Prefers a TM that divides M exactly (no host-side
    jnp.pad copy) and an even grid count (v7x megacore load balance).  TM is
    always >= 16 (bf16 sublane packing) unless M itself is smaller, in which
    case the block covers the full M dim (always legal)."""
    if m < 16:
        return m, m
    for tm in _TM_CANDIDATES:                      # exact divisor, even grid
        if m % tm == 0 and (m // tm) % 2 == 0:
            return tm, m
    for tm in _TM_CANDIDATES:                      # exact divisor
        if m % tm == 0:
            return tm, m
    best_tm, best_key = None, None                 # rare fallback: minimal pad
    for tm in _TM_CANDIDATES:
        grid = -(-m // tm)
        key = (grid % 2, grid * tm - m, -tm)       # even grid, min pad, big TM
        if best_key is None or key < best_key:
            best_tm, best_key = tm, key
    return best_tm, -(-m // best_tm) * best_tm


# ---------------------------------------------------------------------------
# Pallas kernel: fused single-K-step matmul + bias + MFM max.
#   y  = x(TM,K) @ [W1p || W2p](K, 2*Co_pad)  (bf16 operands, f32 accumulate)
#   o  = max(y[:, :Co_pad] + b1p, y[:, Co_pad:] + b2p)  (f32 epilogue, bf16 store)
# No accumulator scratch and no init/finalize branches (K fits one MXU pass);
# W/b block indices are constant across the grid so they are DMA'd once.
# ---------------------------------------------------------------------------
def _mfm_kernel(x_ref, w_ref, b_ref, o_ref):
    co = o_ref.shape[-1]                           # Co padded to 128-lane multiple
    y = jnp.dot(x_ref[...], w_ref[...], preferred_element_type=jnp.float32)
    y = y + b_ref[...]                             # f32 bias (v5e-safe epilogue)
    o_ref[...] = jnp.maximum(y[:, :co], y[:, co:]).astype(o_ref.dtype)


def _mfm_fused_matmul(x2d, wmat, bvec):
    """x2d: (M, K) bf16; wmat: (K, 2*Co_pad) bf16; bvec: (1, 2*Co_pad) f32.
    Returns (M, Co_pad) bf16."""
    m, k = x2d.shape
    co2 = wmat.shape[1]
    co_pad = co2 // 2

    tm, m_pad = _choose_tiling(m)
    if m_pad != m:
        # Rare: M of this network (N*Ho*Wo) is normally a multiple of a large
        # power of two, so no full-activation pad copy is issued.
        x2d = jnp.pad(x2d, ((0, m_pad - m), (0, 0)))

    out = pl.pallas_call(
        _mfm_kernel,
        out_shape=jax.ShapeDtypeStruct((m_pad, co_pad), _COMPUTE_DTYPE),
        grid_spec=pltpu.PrefetchScalarGridSpec(
            num_scalar_prefetch=0,
            grid=(m_pad // tm,),
            in_specs=[
                pl.BlockSpec((tm, k), lambda i: (i, 0)),    # activations (streamed)
                pl.BlockSpec((k, co2), lambda i: (0, 0)),   # [W1p||W2p], fetched once
                pl.BlockSpec((1, co2), lambda i: (0, 0)),   # [b1p||b2p], fetched once
            ],
            out_specs=pl.BlockSpec((tm, co_pad), lambda i: (i, 0)),
        ),
        compiler_params=pltpu.CompilerParams(
            dimension_semantics=("parallel",),   # M axis shards across v7x TCs
            vmem_limit_bytes=32 * 1024 * 1024,
        ),
    )(x2d, wmat, bvec)

    return out[:m] if m_pad != m else out


# ---------------------------------------------------------------------------
# MFM weight/bias packing: [W1 | 0pad || W2 | 0pad], each half padded to a
# multiple of 128 lanes so the in-kernel split and store stay lane-aligned.
# ---------------------------------------------------------------------------
def _build_mfm_weight(weight, bias, co):
    """weight: (2*Co, Cin, kh, kw) torch OIHW; bias: (2*Co,)."""
    c2, cin, kh, kw = weight.shape
    k = cin * kh * kw
    co_pad = _round_up(co, 128)
    wm = weight.reshape(c2, k).T.astype(jnp.float32)        # (K, 2*Co), torch order
    pad_w = ((0, 0), (0, co_pad - co))
    wmat = jnp.concatenate([jnp.pad(wm[:, :co], pad_w),
                            jnp.pad(wm[:, co:], pad_w)], axis=1)
    pad_b = (0, co_pad - co)
    bvec = jnp.concatenate([jnp.pad(bias[:co], pad_b),
                            jnp.pad(bias[co:], pad_b)]).reshape(1, 2 * co_pad)
    return wmat.astype(_COMPUTE_DTYPE), bvec.astype(jnp.float32), co_pad


# ---------------------------------------------------------------------------
# mfm (type=1, Conv2d variant), NHWC: conv -> split channel halves -> max
# ---------------------------------------------------------------------------
def mfm_conv2d_nhwc(x, weight, bias, stride, padding, out_channels):
    """x: (N,H,W,Cin) NHWC; weight: (2*Co,Cin,kh,kw) torch OIHW; bias: (2*Co,).
    Returns (N,Ho,Wo,Co) bf16."""
    n, h, w_, cin = x.shape
    _, _, kh, kw = weight.shape
    co = out_channels
    ho = (h + 2 * padding - kh) // stride + 1
    wo = (w_ + 2 * padding - kw) // stride + 1

    wmat, bvec, co_pad = _build_mfm_weight(weight, bias, co)
    x = x.astype(_COMPUTE_DTYPE)                            # bf16 halves HBM bytes

    if kh == 1 and kw == 1 and stride == 1 and padding == 0:
        x2d = x.reshape(n * h * w_, cin)                    # 1x1: no im2col
    else:
        # TODO(synk): im2col still writes a kh*kw-inflated bf16 patch tensor to
        # HBM; a halo-aware in-kernel patch build would remove this traffic.
        xp = jnp.pad(x, ((0, 0), (padding, padding), (padding, padding), (0, 0)))
        taps = [xp[:, ky:ky + stride * ho:stride, kx:kx + stride * wo:stride, :]
                for ky in range(kh) for kx in range(kw)]
        pat = jnp.stack(taps, axis=-1)                      # (N,Ho,Wo,Cin,kh*kw)
        x2d = pat.reshape(n * ho * wo, cin * kh * kw)       # K order matches torch

    y = _mfm_fused_matmul(x2d, wmat, bvec)                  # (M, Co_pad) bf16
    y = y.reshape(n, ho, wo, co_pad)
    return y[..., :co] if co_pad != co else y


# ---------------------------------------------------------------------------
# group: conv_a = mfm(Cin, Cin, 1, 1, 0) ; conv = mfm(Cin, Cout, k, s, p)
# Activations stay NHWC + bf16 inside the group; the NCHW<->NHWC conversion
# happens once at the (network) boundary.
# ---------------------------------------------------------------------------
@functools.partial(jax.jit, static_argnums=(5, 6, 7, 8))
def _group_forward_impl(x_nchw, wa, ba, w, b, c_in, c_out, stride, padding):
    x = jnp.transpose(x_nchw, (0, 2, 3, 1)).astype(_COMPUTE_DTYPE)  # -> NHWC once
    x = mfm_conv2d_nhwc(x, wa, ba, 1, 0, c_in)              # conv_a: 1x1 MFM
    x = mfm_conv2d_nhwc(x, w, b, stride, padding, c_out)    # conv:   kxk MFM
    return jnp.transpose(x, (0, 3, 1, 2)).astype(jnp.float32)       # -> NCHW once


def group_forward(x_nchw, params):
    return _group_forward_impl(
        x_nchw, params["wa"], params["ba"], params["w"], params["b"],
        params["c_in"], params["c_out"], params["stride"], params["padding"])


def init_group_params(key, in_channels, out_channels, kernel_size, stride, padding):
    k1, k2, k3, k4 = jax.random.split(key, 4)
    # conv_a: Conv2d(Cin, 2*Cin, 1, 1, 0)
    fan_a = in_channels
    wa = jax.random.normal(k1, (2 * in_channels, in_channels, 1, 1),
                           jnp.float32) * (1.0 / fan_a) ** 0.5
    ba = jax.random.normal(k2, (2 * in_channels,), jnp.float32) * 0.01
    # conv: Conv2d(Cin, 2*Cout, k, s, p)
    fan = in_channels * kernel_size * kernel_size
    w = jax.random.normal(k3, (2 * out_channels, in_channels,
                               kernel_size, kernel_size),
                          jnp.float32) * (1.0 / fan) ** 0.5
    b = jax.random.normal(k4, (2 * out_channels,), jnp.float32) * 0.01
    return {"wa": wa, "ba": ba, "w": w, "b": b,
            "c_in": in_channels, "c_out": out_channels,
            "stride": stride, "padding": padding}


# ---------------------------------------------------------------------------
# Pure-JAX reference (correctness check only) -- mirrors the kernel numerics:
# bf16 conv operands, f32 accumulation + bias + max, bf16 output store.
# ---------------------------------------------------------------------------
def _ref_mfm_conv(x_nchw, w, b, stride, pad, co):
    xq = x_nchw.astype(_COMPUTE_DTYPE).astype(jnp.float32)
    wq = w.astype(_COMPUTE_DTYPE).astype(jnp.float32)
    y = jax.lax.conv_general_dilated(
        xq, wq, (stride, stride), ((pad, pad), (pad, pad)),
        dimension_numbers=("NCHW", "OIHW", "NCHW"))
    y = y + b.astype(jnp.float32).reshape(1, -1, 1, 1)
    y = jnp.maximum(y[:, :co], y[:, co:])
    return y.astype(_COMPUTE_DTYPE).astype(jnp.float32)     # bf16 store roundtrip


def _ref_group(x_nchw, p):
    x = _ref_mfm_conv(x_nchw, p["wa"], p["ba"], 1, 0, p["c_in"])
    return _ref_mfm_conv(x, p["w"], p["b"], p["stride"], p["padding"], p["c_out"])


if __name__ == "__main__":
    key = jax.random.PRNGKey(0)
    kx1, kp1, kx2, kp2 = jax.random.split(key, 4)

    # Tolerance reflects bf16 MXU operands + bf16 output store (fp32 accumulate);
    # structural bugs would show up as O(1) errors.
    ATOL = RTOL = 2e-2

    # Config A: tiny smoke test -- group(4, 8, 3, 1, 1) on a (2,4,16,16) input.
    xA = jax.random.normal(kx1, (2, 4, 16, 16), jnp.float32)   # NCHW like torch
    pA = init_group_params(kp1, 4, 8, 3, 1, 1)
    outA = jax.block_until_ready(group_forward(xA, pA))
    refA = jax.block_until_ready(_ref_group(xA, pA))
    assert outA.shape == (2, 8, 16, 16), outA.shape
    assert jnp.allclose(outA, refA, atol=ATOL, rtol=RTOL), \
        float(jnp.max(jnp.abs(outA - refA)))

    # Config B: group1-shaped channels -- group(48, 96, 3, 1, 1) at 16x16.
    xB = jax.random.normal(kx2, (2, 48, 16, 16), jnp.float32)
    pB = init_group_params(kp2, 48, 96, 3, 1, 1)
    outB = jax.block_until_ready(group_forward(xB, pB))
    refB = jax.block_until_ready(_ref_group(xB, pB))
    assert outB.shape == (2, 96, 16, 16), outB.shape
    assert jnp.allclose(outB, refB, atol=ATOL, rtol=RTOL), \
        float(jnp.max(jnp.abs(outB - refB)))

    print("KERNEL_OK")
</pallas_src>

<mosaic_0001>
module attributes {stable_mosaic.version = 11 : i64} {
  func.func @_mfm_kernel(%arg0: i32, %arg1: memref<256x4xbf16, #tpu.memory_space<vmem>>, %arg2: memref<4x256xbf16, #tpu.memory_space<vmem>>, %arg3: memref<1x256xf32, #tpu.memory_space<vmem>>, %arg4: memref<256x128xbf16, #tpu.memory_space<vmem>>) attributes {dimension_semantics = [#tpu.dimension_semantics<parallel>], iteration_bounds = array<i64: 2>, scalar_prefetch = 0 : i64, scratch_operands = 0 : i64, tpu.core_type = #tpu.core_type<tc>, window_params = [{transform_indices = @transform_0, window_bounds = array<i64: 256, 4>}, {pipeline_mode = #tpu.pipeline_mode<synchronous>, transform_indices = @transform_1, window_bounds = array<i64: 4, 256>}, {pipeline_mode = #tpu.pipeline_mode<synchronous>, transform_indices = @transform_2, window_bounds = array<i64: 1, 256>}, {transform_indices = @transform_3, window_bounds = array<i64: 256, 128>}]} {
    %c0 = arith.constant 0 : index
    %c0_0 = arith.constant 0 : index
    %0 = vector.load %arg1[%c0, %c0_0] : memref<256x4xbf16, #tpu.memory_space<vmem>>, vector<256x4xbf16>
    %c0_1 = arith.constant 0 : index
    %c0_2 = arith.constant 0 : index
    %1 = vector.load %arg2[%c0_1, %c0_2] : memref<4x256xbf16, #tpu.memory_space<vmem>>, vector<4x256xbf16>
    %cst = arith.constant dense<0.000000e+00> : vector<256x256xf32>
    %2 = tpu.matmul %0, %1, %cst {dimension_numbers = #tpu.dot_dimension_numbers<[1], [0], [0], [1], [0, 0, 1, 1], [], []>} : vector<256x4xbf16>, vector<4x256xbf16>, vector<256x256xf32> -> vector<256x256xf32>
    %c0_3 = arith.constant 0 : index
    %c0_4 = arith.constant 0 : index
    %3 = vector.load %arg3[%c0_3, %c0_4] : memref<1x256xf32, #tpu.memory_space<vmem>>, vector<1x256xf32>
    %4 = vector.broadcast %3 : vector<1x256xf32> to vector<256x256xf32>
    %5 = arith.addf %2, %4 : vector<256x256xf32>
    %6 = vector.extract_strided_slice %5 {offsets = [0, 0], sizes = [256, 128], strides = [1, 1]} : vector<256x256xf32> to vector<256x128xf32>
    %7 = vector.extract_strided_slice %5 {offsets = [0, 128], sizes = [256, 128], strides = [1, 1]} : vector<256x256xf32> to vector<256x128xf32>
    %8 = arith.maximumf %6, %7 : vector<256x128xf32>
    %9 = arith.truncf %8 : vector<256x128xf32> to vector<256x128xbf16>
    %c0_5 = arith.constant 0 : index
    %c0_6 = arith.constant 0 : index
    %10 = vector.load %arg4[%c0_5, %c0_6] : memref<256x128xbf16, #tpu.memory_space<vmem>>, vector<256x128xbf16>
    tpu.vector_store %arg4[%c0_5, %c0_6], %9 {strides = array<i32>} : memref<256x128xbf16, #tpu.memory_space<vmem>>, vector<256x128xbf16>,
    return
  }
  func.func @transform_0(%arg0: i32) -> (i32, i32) {
    %c0_i32 = arith.constant 0 : i32
    %c0_i32_0 = arith.constant 0 : i32
    return %arg0, %c0_i32 : i32, i32
  }
  func.func @transform_1(%arg0: i32) -> (i32, i32) {
    %c0_i32 = arith.constant 0 : i32
    %c0_i32_0 = arith.constant 0 : i32
    %c0_i32_1 = arith.constant 0 : i32
    return %c0_i32, %c0_i32_0 : i32, i32
  }
  func.func @transform_2(%arg0: i32) -> (i32, i32) {
    %c0_i32 = arith.constant 0 : i32
    %c0_i32_0 = arith.constant 0 : i32
    %c0_i32_1 = arith.constant 0 : i32
    return %c0_i32, %c0_i32_0 : i32, i32
  }
  func.func @transform_3(%arg0: i32) -> (i32, i32) {
    %c0_i32 = arith.constant 0 : i32
    %c0_i32_0 = arith.constant 0 : i32
    return %arg0, %c0_i32 : i32, i32
  }
}

module attributes {stable_mosaic.version = 11 : i64} {
  func.func @_mfm_kernel(%arg0: i32, %arg1: memref<256x36xbf16, #tpu.memory_space<vmem>>, %arg2: memref<36x256xbf16, #tpu.memory_space<vmem>>, %arg3: memref<1x256xf32, #tpu.memory_space<vmem>>, %arg4: memref<256x128xbf16, #tpu.memory_space<vmem>>) attributes {dimension_semantics = [#tpu.dimension_semantics<parallel>], iteration_bounds = array<i64: 2>, scalar_prefetch = 0 : i64, scratch_operands = 0 : i64, tpu.core_type = #tpu.core_type<tc>, window_params = [{transform_indices = @transform_0, window_bounds = array<i64: 256, 36>}, {pipeline_mode = #tpu.pipeline_mode<synchronous>, transform_indices = @transform_1, window_bounds = array<i64: 36, 256>}, {pipeline_mode = #tpu.pipeline_mode<synchronous>, transform_indices = @transform_2, window_bounds = array<i64: 1, 256>}, {transform_indices = @transform_3, window_bounds = array<i64: 256, 128>}]} {
    %c0 = arith.constant 0 : index
    %c0_0 = arith.constant 0 : index
    %0 = vector.load %arg1[%c0, %c0_0] : memref<256x36xbf16, #tpu.memory_space<vmem>>, vector<256x36xbf16>
    %c0_1 = arith.constant 0 : index
    %c0_2 = arith.constant 0 : index
    %1 = vector.load %arg2[%c0_1, %c0_2] : memref<36x256xbf16, #tpu.memory_space<vmem>>, vector<36x256xbf16>
    %cst = arith.constant dense<0.000000e+00> : vector<256x256xf32>
    %2 = tpu.matmul %0, %1, %cst {dimension_numbers = #tpu.dot_dimension_numbers<[1], [0], [0], [1], [0, 0, 1, 1], [], []>} : vector<256x36xbf16>, vector<36x256xbf16>, vector<256x256xf32> -> vector<256x256xf32>
    %c0_3 = arith.constant 0 : index
    %c0_4 = arith.constant 0 : index
    %3 = vector.load %arg3[%c0_3, %c0_4] : memref<1x256xf32, #tpu.memory_space<vmem>>, vector<1x256xf32>
    %4 = vector.broadcast %3 : vector<1x256xf32> to vector<256x256xf32>
    %5 = arith.addf %2, %4 : vector<256x256xf32>
    %6 = vector.extract_strided_slice %5 {offsets = [0, 0], sizes = [256, 128], strides = [1, 1]} : vector<256x256xf32> to vector<256x128xf32>
    %7 = vector.extract_strided_slice %5 {offsets = [0, 128], sizes = [256, 128], strides = [1, 1]} : vector<256x256xf32> to vector<256x128xf32>
    %8 = arith.maximumf %6, %7 : vector<256x128xf32>
    %9 = arith.truncf %8 : vector<256x128xf32> to vector<256x128xbf16>
    %c0_5 = arith.constant 0 : index
    %c0_6 = arith.constant 0 : index
    %10 = vector.load %arg4[%c0_5, %c0_6] : memref<256x128xbf16, #tpu.memory_space<vmem>>, vector<256x128xbf16>
    tpu.vector_store %arg4[%c0_5, %c0_6], %9 {strides = array<i32>} : memref<256x128xbf16, #tpu.memory_space<vmem>>, vector<256x128xbf16>,
    return
  }
  func.func @transform_0(%arg0: i32) -> (i32, i32) {
    %c0_i32 = arith.constant 0 : i32
    %c0_i32_0 = arith.constant 0 : i32
    return %arg0, %c0_i32 : i32, i32
  }
  func.func @transform_1(%arg0: i32) -> (i32, i32) {
    %c0_i32 = arith.constant 0 : i32
    %c0_i32_0 = arith.constant 0 : i32
    %c0_i32_1 = arith.constant 0 : i32
    return %c0_i32, %c0_i32_0 : i32, i32
  }
  func.func @transform_2(%arg0: i32) -> (i32, i32) {
    %c0_i32 = arith.constant 0 : i32
    %c0_i32_0 = arith.constant 0 : i32
    %c0_i32_1 = arith.constant 0 : i32
    return %c0_i32, %c0_i32_0 : i32, i32
  }
  func.func @transform_3(%arg0: i32) -> (i32, i32) {
    %c0_i32 = arith.constant 0 : i32
    %c0_i32_0 = arith.constant 0 : i32
    return %arg0, %c0_i32 : i32, i32
  }
}

</mosaic_0001>

<bundles_post_ra>
// kernel: _group_forward_impl.2
= control target key start
LH: loop header
LB: loop body
LE: loop exit
PB: predicated region body
PF: predicated region fallthrough
CT: control target
= control target key end

     0   :  { %s1066_s12 = smov 0   ;;  %s1216_s0 = inlined_call_operand.vmem [shape: bf16[512,4], index: 0, kind: input, shape index: {}]   ;;  %s1217_s1 = inlined_call_operand.vmem [shape: bf16[4,256], index: 1, kind: input, shape index: {}]   ;;  %s1218_s2 = inlined_call_operand.vmem [shape: f32[1,256], index: 2, kind: input, shape index: {}]   ;;  %s1219_s3 = inlined_call_operand.vmem [shape: bf16[512,128], index: 3, kind: output, shape index: {}]  }
   0x1 LB: > { %s806_s13 = sadd.s32 4294967295, %s1043_s12   ;;  %p810_p0 = scmp.ge.s32.totalorder %s1043_s12, 1  ;;  %s1043_s12 = sphi %s1066_s12, %s13_s12  }
   0x2   : > { %p138_p1 = scmp.lt.s32.totalorder %s1043_s12, 3 }
   0x4   : > { %p139_p2 = pnand %p810_p0, %p138_p1 }
   0x5   : > { %s811_s16 = sshll.u32 (!%p139_p2), %s806_s13, 5 }
   0x6   : > { %142 = sbr.rel (%p139_p2) target bundleno = 280 (0x118), region = 32  ;;  %p163_p3 = scmp.lt.s32.totalorder (!%p139_p2), %s811_s16, 63 }
   0xb   : > { %v831_v0 = vld.sshfl [vmem:[%s1217_s1] sm:$0x33 pattern:$0x76325410]  ;;  %vm358_vm0 = vcmask 1041408   ;;  %v1045_v3 = vmov 0   ;;  %v210_v20 = vlaneseq }
   0xc   : > { %v308_v1 = vcombine.high %v831_v0, %v831_v0  ;;  %v360_v2 = vsel %vm358_vm0, %v831_v0, 0  ;;  %397 = vmatprep.mubr.bf16.mxu0 %v1045_v3  ;;  %477 = vmatprep.mubr.bf16.mxu1 %v1045_v3  ;;  %s1221_s16 = smov (!%p163_p3, %s811_s16), 63  ;;  %vm309_vm1 = vcmask 31744   ;;  %v208_v24 = vld [vmem:[%s1218_s2] sm:$0x3] }
   0xd   : > { %s812_s17 = sshll.u32 %s1221_s16, 2  ;;  %v211_v21 = vshrl.u32 %v210_v20, 7 }
   0xe   : > { %832 = vmatprep.subr.msk.bf16.mxu0 %vm358_vm0, %v308_v1  ;;  %1010 = vmatprep.subr.msk.bf16.mxu1 %vm358_vm0, %v308_v1  ;;  %s1085_s20 = scalar_lea.vmem %s1216_s0, %s812_s17  ;;  %s1139_s25 = scalar_lea.vmem %s1219_s3, %s812_s17 }
   0xf   : > { %380 = vmatpush1.bf16.msra.mxu0 %v360_v2  ;;  %1011 = vmatpush1.bf16.msra.mxu1 %v360_v2  ;;  %v1021_v4 = vld [vmem:[%s1085_s20] sm:$0xff]   ;;  %v1023_v6 = vld [vmem:[%s1085_s20 + $0x8] sm:$0xff]   ;;  %v1025_v8 = vld [vmem:[%s1085_s20 + $0x10] sm:$0xff]   ;;  %v216_v22 = vsub.s32 1, %v211_v21  ;;  %v212_v23 = vsub.s32 0, %v211_v21 }
  0x10   : > { %v1022_v5 = vld [vmem:[%s1085_s20 + $0x40] sm:$0xff]   ;;  %v1024_v7 = vld [vmem:[%s1085_s20 + $0x48] sm:$0xff]   ;;  %v1026_v9 = vld [vmem:[%s1085_s20 + $0x50] sm:$0xff]  }
  0x11   : > { %v1027_v10 = vld [vmem:[%s1085_s20 + $0x18] sm:$0xff]   ;;  %v1029_v12 = vld [vmem:[%s1085_s20 + $0x20] sm:$0xff]   ;;  %v1031_v14 = vld [vmem:[%s1085_s20 + $0x28] sm:$0xff]   ;;  %v1122_v27 = vrot.slane %v208_v24, %v216_v22  ;;  %v1124_v29 = vrot.slane %v208_v24, %v212_v23 }
  0x12   : > { %833 = vmatmul.mubr.msk.bf16.vlgmr.msra.gmra.mxu0 %vm309_vm1, %v1021_v4  ;;  %841 = vmatmul.mubr.msk.bf16.vlgmr.msra.gmra.mxu1 %vm309_vm1, %v1022_v5  ;;  %v1028_v11 = vld [vmem:[%s1085_s20 + $0x58] sm:$0xff]   ;;  %v1030_v13 = vld [vmem:[%s1085_s20 + $0x60] sm:$0xff]   ;;  %v1032_v15 = vld [vmem:[%s1085_s20 + $0x68] sm:$0xff]  }
  0x13   : > { %407 = vmatprep.mubr.bf16.mxu0 %v1045_v3  ;;  %487 = vmatprep.mubr.bf16.mxu1 %v1045_v3  ;;  %v1033_v16 = vld [vmem:[%s1085_s20 + $0x30] sm:$0xff]   ;;  %v1035_v18 = vld [vmem:[%s1085_s20 + $0x38] sm:$0xff]  }
  0x14   : > { %v1034_v17 = vld [vmem:[%s1085_s20 + $0x70] sm:$0xff]   ;;  %v1036_v19 = vld [vmem:[%s1085_s20 + $0x78] sm:$0xff]  }
  0x1a   : > { %834 = vmatmul.mubr.msk.bf16.gmra.mxu0 %vm309_vm1, %v1023_v6  ;;  %842 = vmatmul.mubr.msk.bf16.gmra.mxu1 %vm309_vm1, %v1024_v7 }
  0x1b   : > { %417 = vmatprep.mubr.bf16.mxu0 %v1045_v3  ;;  %497 = vmatprep.mubr.bf16.mxu1 %v1045_v3 }
  0x22   : > { %835 = vmatmul.mubr.msk.bf16.gmra.mxu0 %vm309_vm1, %v1025_v8  ;;  %843 = vmatmul.mubr.msk.bf16.gmra.mxu1 %vm309_vm1, %v1026_v9 }
  0x23   : > { %427 = vmatprep.mubr.bf16.mxu0 %v1045_v3  ;;  %507 = vmatprep.mubr.bf16.mxu1 %v1045_v3 }
  0x2a   : > { %836 = vmatmul.mubr.msk.bf16.gmra.mxu0 %vm309_vm1, %v1027_v10  ;;  %844 = vmatmul.mubr.msk.bf16.gmra.mxu1 %vm309_vm1, %v1028_v11 }
  0x2b   : > { %437 = vmatprep.mubr.bf16.mxu0 %v1045_v3  ;;  %517 = vmatprep.mubr.bf16.mxu1 %v1045_v3 }
  0x32   : > { %837 = vmatmul.mubr.msk.bf16.gmra.mxu0 %vm309_vm1, %v1029_v12  ;;  %845 = vmatmul.mubr.msk.bf16.gmra.mxu1 %vm309_vm1, %v1030_v13 }
  0x33   : > { %447 = vmatprep.mubr.bf16.mxu0 %v1045_v3  ;;  %527 = vmatprep.mubr.bf16.mxu1 %v1045_v3 }
  0x3a   : > { %838 = vmatmul.mubr.msk.bf16.gmra.mxu0 %vm309_vm1, %v1031_v14  ;;  %846 = vmatmul.mubr.msk.bf16.gmra.mxu1 %vm309_vm1, %v1032_v15 }
  0x3b   : > { %457 = vmatprep.mubr.bf16.mxu0 %v1045_v3  ;;  %537 = vmatprep.mubr.bf16.mxu1 %v1045_v3 }
  0x42   : > { %839 = vmatmul.mubr.msk.bf16.gmra.mxu0 %vm309_vm1, %v1033_v16  ;;  %847 = vmatmul.mubr.msk.bf16.gmra.mxu1 %vm309_vm1, %v1034_v17 }
  0x43   : > { %467 = vmatprep.mubr.bf16.mxu0 %v1045_v3  ;;  %547 = vmatprep.mubr.bf16.mxu1 %v1045_v3 }
  0x4a   : > { %840 = vmatmul.mubr.msk.bf16.gmra.mxu0 %vm309_vm1, %v1035_v18  ;;  %848 = vmatmul.mubr.msk.bf16.gmra.mxu1 %vm309_vm1, %v1036_v19 }
  0xd2   : > { %v399_v25 = vpop.f32.mrf.mxu0  ;;  %v479_v26 = vpop.f32.mrf.mxu1 }
  0xd3   : > { %v400_v36 = vadd.f32 %v399_v25, %v1124_v29  ;;  %v480_v40 = vadd.f32 %v479_v26, %v1124_v29 }
  0xd4   : > { %v401_v28 = vpop.f32.mrf.mxu0  ;;  %v481_v30 = vpop.f32.mrf.mxu1 }
  0xd5   : > { %v402_v32 = vadd.f32 %v401_v28, %v1122_v27  ;;  %v482_v34 = vadd.f32 %v481_v30, %v1122_v27 }
  0xd6   : > { %v403_v31 = vpop.f32.mrf.mxu0  ;;  %v483_v33 = vpop.f32.mrf.mxu1 }
  0xd7   : > { %v404_v37 = vadd.f32 %v403_v31, %v1124_v29  ;;  %v484_v41 = vadd.f32 %v483_v33, %v1124_v29  ;;  %v558_v44 = vmax.f32 %v400_v36, %v402_v32  ;;  %v574_v47 = vmax.f32 %v480_v40, %v482_v34 }
  0xd8   : > { %v405_v35 = vpop.f32.mrf.mxu0  ;;  %v485_v39 = vpop.f32.mrf.mxu1 }
  0xd9   : > { %v406_v38 = vadd.f32 %v405_v35, %v1122_v27  ;;  %v486_v42 = vadd.f32 %v485_v39, %v1122_v27 }
  0xda   : > { %v409_v43 = vpop.f32.mrf.mxu0  ;;  %v489_v46 = vpop.f32.mrf.mxu1 }
  0xdb   : > { %v559_v45 = vmax.f32 %v404_v37, %v406_v38  ;;  %v575_v48 = vmax.f32 %v484_v41, %v486_v42  ;;  %v410_v58 = vadd.f32 %v409_v43, %v1124_v29  ;;  %v490_v62 = vadd.f32 %v489_v46, %v1124_v29 }
  0xdc   : > { %v411_v49 = vpop.f32.mrf.mxu0  ;;  %v491_v51 = vpop.f32.mrf.mxu1 }
  0xdd   : > { %v918_v50 = vpack.c.bf16 %v559_v45, %v558_v44  ;;  %v958_v52 = vpack.c.bf16 %v575_v48, %v574_v47  ;;  %v412_v54 = vadd.f32 %v411_v49, %v1122_v27  ;;  %v492_v56 = vadd.f32 %v491_v51, %v1122_v27 }
  0xde   : > { %v413_v53 = vpop.f32.mrf.mxu0  ;;  %v493_v55 = vpop.f32.mrf.mxu1 }
  0xdf   : > { %919 = vst [vmem:[%s1139_s25] sm:$0xff] %v918_v50   ;;  %1002 = vst [vmem:[%s1139_s25 + $0x40] sm:$0xff] %v958_v52   ;;  %v414_v59 = vadd.f32 %v413_v53, %v1124_v29  ;;  %v494_v63 = vadd.f32 %v493_v55, %v1124_v29  ;;  %v560_v2 = vmax.f32 %v410_v58, %v412_v54 }
  0xe0   : > { %v415_v57 = vpop.f32.mrf.mxu0  ;;  %v495_v61 = vpop.f32.mrf.mxu1  ;;  %v576_v5 = vmax.f32 %v490_v62, %v492_v56 }
  0xe1   : > { %v416_v60 = vadd.f32 %v415_v57, %v1122_v27  ;;  %v496_v0 = vadd.f32 %v495_v61, %v1122_v27 }
  0xe2   : > { %v419_v1 = vpop.f32.mrf.mxu0  ;;  %v499_v4 = vpop.f32.mrf.mxu1 }
  0xe3   : > { %v561_v3 = vmax.f32 %v414_v59, %v416_v60  ;;  %v577_v6 = vmax.f32 %v494_v63, %v496_v0  ;;  %v420_v16 = vadd.f32 %v419_v1, %v1124_v29  ;;  %v500_v20 = vadd.f32 %v499_v4, %v1124_v29 }
  0xe4   : > { %v421_v7 = vpop.f32.mrf.mxu0  ;;  %v501_v9 = vpop.f32.mrf.mxu1 }
  0xe5   : > { %v923_v8 = vpack.c.bf16 %v561_v3, %v560_v2  ;;  %v963_v10 = vpack.c.bf16 %v577_v6, %v576_v5  ;;  %v422_v12 = vadd.f32 %v421_v7, %v1122_v27  ;;  %v502_v14 = vadd.f32 %v501_v9, %v1122_v27 }
  0xe6   : > { %v423_v11 = vpop.f32.mrf.mxu0  ;;  %v503_v13 = vpop.f32.mrf.mxu1 }
  0xe7   : > { %995 = vst [vmem:[%s1139_s25 + $0x8] sm:$0xff] %v923_v8   ;;  %1003 = vst [vmem:[%s1139_s25 + $0x48] sm:$0xff] %v963_v10   ;;  %v424_v17 = vadd.f32 %v423_v11, %v1124_v29  ;;  %v504_v21 = vadd.f32 %v503_v13, %v1124_v29  ;;  %v562_v24 = vmax.f32 %v420_v16, %v422_v12 }
  0xe8   : > { %v425_v15 = vpop.f32.mrf.mxu0  ;;  %v505_v19 = vpop.f32.mrf.mxu1  ;;  %v578_v28 = vmax.f32 %v500_v20, %v502_v14 }
  0xe9   : > { %v426_v18 = vadd.f32 %v425_v15, %v1122_v27  ;;  %v506_v22 = vadd.f32 %v505_v19, %v1122_v27 }
  0xea   : > { %v429_v23 = vpop.f32.mrf.mxu0  ;;  %v509_v26 = vpop.f32.mrf.mxu1 }
  0xeb   : > { %v563_v25 = vmax.f32 %v424_v17, %v426_v18  ;;  %v579_v30 = vmax.f32 %v504_v21, %v506_v22  ;;  %v430_v40 = vadd.f32 %v429_v23, %v1124_v29  ;;  %v510_v44 = vadd.f32 %v509_v26, %v1124_v29 }
  0xec   : > { %v431_v31 = vpop.f32.mrf.mxu0  ;;  %v511_v33 = vpop.f32.mrf.mxu1 }
  0xed   : > { %v928_v32 = vpack.c.bf16 %v563_v25, %v562_v24  ;;  %v968_v34 = vpack.c.bf16 %v579_v30, %v578_v28  ;;  %v432_v36 = vadd.f32 %v431_v31, %v1122_v27  ;;  %v512_v38 = vadd.f32 %v511_v33, %v1122_v27 }
  0xee   : > { %v433_v35 = vpop.f32.mrf.mxu0  ;;  %v513_v37 = vpop.f32.mrf.mxu1 }
  0xef   : > { %996 = vst [vmem:[%s1139_s25 + $0x10] sm:$0xff] %v928_v32   ;;  %1004 = vst [vmem:[%s1139_s25 + $0x50] sm:$0xff] %v968_v34   ;;  %v434_v41 = vadd.f32 %v433_v35, %v1124_v29  ;;  %v514_v45 = vadd.f32 %v513_v37, %v1124_v29  ;;  %v564_v48 = vmax.f32 %v430_v40, %v432_v36 }
  0xf0   : > { %v435_v39 = vpop.f32.mrf.mxu0  ;;  %v515_v43 = vpop.f32.mrf.mxu1  ;;  %v580_v51 = vmax.f32 %v510_v44, %v512_v38 }
  0xf1   : > { %v436_v42 = vadd.f32 %v435_v39, %v1122_v27  ;;  %v516_v46 = vadd.f32 %v515_v43, %v1122_v27 }
  0xf2   : > { %v439_v47 = vpop.f32.mrf.mxu0  ;;  %v519_v50 = vpop.f32.mrf.mxu1 }
  0xf3   : > { %v565_v49 = vmax.f32 %v434_v41, %v436_v42  ;;  %v581_v52 = vmax.f32 %v514_v45, %v516_v46  ;;  %v440_v62 = vadd.f32 %v439_v47, %v1124_v29  ;;  %v520_v2 = vadd.f32 %v519_v50, %v1124_v29 }
  0xf4   : > { %v441_v53 = vpop.f32.mrf.mxu0  ;;  %v521_v55 = vpop.f32.mrf.mxu1 }
  0xf5   : > { %v933_v54 = vpack.c.bf16 %v565_v49, %v564_v48  ;;  %v973_v56 = vpack.c.bf16 %v581_v52, %v580_v51  ;;  %v442_v58 = vadd.f32 %v441_v53, %v1122_v27  ;;  %v522_v60 = vadd.f32 %v521_v55, %v1122_v27 }
  0xf6   : > { %v443_v57 = vpop.f32.mrf.mxu0  ;;  %v523_v59 = vpop.f32.mrf.mxu1 }
  0xf7   : > { %997 = vst [vmem:[%s1139_s25 + $0x18] sm:$0xff] %v933_v54   ;;  %1005 = vst [vmem:[%s1139_s25 + $0x58] sm:$0xff] %v973_v56   ;;  %v444_v63 = vadd.f32 %v443_v57, %v1124_v29  ;;  %v524_v3 = vadd.f32 %v523_v59, %v1124_v29  ;;  %v566_v6 = vmax.f32 %v440_v62, %v442_v58 }
  0xf8   : > { %v445_v61 = vpop.f32.mrf.mxu0  ;;  %v525_v1 = vpop.f32.mrf.mxu1  ;;  %v582_v9 = vmax.f32 %v520_v2, %v522_v60 }
  0xf9   : > { %v446_v0 = vadd.f32 %v445_v61, %v1122_v27  ;;  %v526_v4 = vadd.f32 %v525_v1, %v1122_v27 }
  0xfa   : > { %v449_v5 = vpop.f32.mrf.mxu0  ;;  %v529_v8 = vpop.f32.mrf.mxu1 }
  0xfb   : > { %v567_v7 = vmax.f32 %v444_v63, %v446_v0  ;;  %v583_v10 = vmax.f32 %v524_v3, %v526_v4  ;;  %v450_v20 = vadd.f32 %v449_v5, %v1124_v29  ;;  %v530_v24 = vadd.f32 %v529_v8, %v1124_v29 }
  0xfc   : > { %v451_v11 = vpop.f32.mrf.mxu0  ;;  %v531_v13 = vpop.f32.mrf.mxu1 }
  0xfd   : > { %v938_v12 = vpack.c.bf16 %v567_v7, %v566_v6  ;;  %v978_v14 = vpack.c.bf16 %v583_v10, %v582_v9  ;;  %v452_v16 = vadd.f32 %v451_v11, %v1122_v27  ;;  %v532_v18 = vadd.f32 %v531_v13, %v1122_v27 }
  0xfe   : > { %v453_v15 = vpop.f32.mrf.mxu0  ;;  %v533_v17 = vpop.f32.mrf.mxu1 }
  0xff   : > { %998 = vst [vmem:[%s1139_s25 + $0x20] sm:$0xff] %v938_v12   ;;  %1006 = vst [vmem:[%s1139_s25 + $0x60] sm:$0xff] %v978_v14   ;;  %v454_v21 = vadd.f32 %v453_v15, %v1124_v29  ;;  %v534_v25 = vadd.f32 %v533_v17, %v1124_v29  ;;  %v568_v30 = vmax.f32 %v450_v20, %v452_v16 }
 0x100   : > { %v455_v19 = vpop.f32.mrf.mxu0  ;;  %v535_v23 = vpop.f32.mrf.mxu1  ;;  %v584_v33 = vmax.f32 %v530_v24, %v532_v18 }
 0x101   : > { %v456_v22 = vadd.f32 %v455_v19, %v1122_v27  ;;  %v536_v26 = vadd.f32 %v535_v23, %v1122_v27 }
 0x102   : > { %v459_v28 = vpop.f32.mrf.mxu0  ;;  %v539_v32 = vpop.f32.mrf.mxu1 }
 0x103   : > { %v569_v31 = vmax.f32 %v454_v21, %v456_v22  ;;  %v585_v34 = vmax.f32 %v534_v25, %v536_v26  ;;  %v460_v44 = vadd.f32 %v459_v28, %v1124_v29  ;;  %v540_v48 = vadd.f32 %v539_v32, %v1124_v29 }
 0x104   : > { %v461_v35 = vpop.f32.mrf.mxu0  ;;  %v541_v37 = vpop.f32.mrf.mxu1 }
 0x105   : > { %v943_v36 = vpack.c.bf16 %v569_v31, %v568_v30  ;;  %v983_v38 = vpack.c.bf16 %v585_v34, %v584_v33  ;;  %v462_v40 = vadd.f32 %v461_v35, %v1122_v27  ;;  %v542_v42 = vadd.f32 %v541_v37, %v1122_v27 }
 0x106   : > { %v463_v39 = vpop.f32.mrf.mxu0  ;;  %v543_v41 = vpop.f32.mrf.mxu1 }
 0x107   : > { %999 = vst [vmem:[%s1139_s25 + $0x28] sm:$0xff] %v943_v36   ;;  %1007 = vst [vmem:[%s1139_s25 + $0x68] sm:$0xff] %v983_v38   ;;  %v464_v45 = vadd.f32 %v463_v39, %v1124_v29  ;;  %v544_v49 = vadd.f32 %v543_v41, %v1124_v29  ;;  %v570_v52 = vmax.f32 %v460_v44, %v462_v40 }
 0x108   : > { %v465_v43 = vpop.f32.mrf.mxu0  ;;  %v545_v47 = vpop.f32.mrf.mxu1  ;;  %v586_v55 = vmax.f32 %v540_v48, %v542_v42 }
 0x109   : > { %v466_v46 = vadd.f32 %v465_v43, %v1122_v27  ;;  %v546_v50 = vadd.f32 %v545_v47, %v1122_v27 }
 0x10a   : > { %v469_v51 = vpop.f32.mrf.mxu0  ;;  %v549_v54 = vpop.f32.mrf.mxu1 }
 0x10b   : > { %v571_v53 = vmax.f32 %v464_v45, %v466_v46  ;;  %v587_v56 = vmax.f32 %v544_v49, %v546_v50  ;;  %v470_v2 = vadd.f32 %v469_v51, %v1124_v29  ;;  %v550_v6 = vadd.f32 %v549_v54, %v1124_v29 }
 0x10c   : > { %v471_v57 = vpop.f32.mrf.mxu0  ;;  %v551_v59 = vpop.f32.mrf.mxu1 }
 0x10d   : > { %v948_v58 = vpack.c.bf16 %v571_v53, %v570_v52  ;;  %v988_v60 = vpack.c.bf16 %v587_v56, %v586_v55  ;;  %v472_v62 = vadd.f32 %v471_v57, %v1122_v27  ;;  %v552_v0 = vadd.f32 %v551_v59, %v1122_v27 }
 0x10e   : > { %v473_v61 = vpop.f32.mrf.mxu0  ;;  %v553_v63 = vpop.f32.mrf.mxu1 }
 0x10f   : > { %1000 = vst [vmem:[%s1139_s25 + $0x30] sm:$0xff] %v948_v58   ;;  %1008 = vst [vmem:[%s1139_s25 + $0x70] sm:$0xff] %v988_v60   ;;  %v474_v3 = vadd.f32 %v473_v61, %v1124_v29  ;;  %v554_v7 = vadd.f32 %v553_v63, %v1124_v29  ;;  %v572_v9 = vmax.f32 %v470_v2, %v472_v62 }
 0x110   : > { %v475_v1 = vpop.f32.mrf.mxu0  ;;  %v555_v5 = vpop.f32.mrf.mxu1  ;;  %v588_v11 = vmax.f32 %v550_v6, %v552_v0 }
 0x111   : > { %v476_v4 = vadd.f32 %v475_v1, %v1122_v27  ;;  %v556_v8 = vadd.f32 %v555_v5, %v1122_v27 }
 0x113   : > { %v573_v10 = vmax.f32 %v474_v3, %v476_v4  ;;  %v589_v12 = vmax.f32 %v554_v7, %v556_v8 }
 0x115   : > { %v953_v13 = vpack.c.bf16 %v573_v10, %v572_v9  ;;  %v993_v14 = vpack.c.bf16 %v589_v12, %v588_v11 }
 0x117   : > { %1001 = vst [vmem:[%s1139_s25 + $0x38] sm:$0xff] %v953_v13   ;;  %1009 = vst [vmem:[%s1139_s25 + $0x78] sm:$0xff] %v993_v14  }
 0x118 PF: > { %s13_s12 = sadd.s32 1, %s1043_s12  }
 0x119   : > { %p10_p4 = scmp.ge.s32.totalorder %s13_s12, 4  }
 0x11b   :  { %12 = sbr.rel (!%p10_p4) target bundleno = 1 (0x1), region = 62 }

// kernel: _group_forward_impl.3
= control target key start
LH: loop header
LB: loop body
LE: loop exit
PB: predicated region body
PF: predicated region fallthrough
CT: control target
= control target key end

     0   :  { %s1103_s12 = smov 0   ;;  %s1281_s0 = inlined_call_operand.vmem [shape: bf16[512,36], index: 0, kind: input, shape index: {}]   ;;  %s1282_s1 = inlined_call_operand.vmem [shape: bf16[36,256], index: 1, kind: input, shape index: {}]   ;;  %s1283_s2 = inlined_call_operand.vmem [shape: f32[1,256], index: 2, kind: input, shape index: {}]   ;;  %s1284_s3 = inlined_call_operand.vmem [shape: bf16[512,128], index: 3, kind: output, shape index: {}]  }
   0x1 LB: > { %s826_s13 = sadd.s32 4294967295, %s1080_s12   ;;  %p830_p0 = scmp.ge.s32.totalorder %s1080_s12, 1  ;;  %s1080_s12 = sphi %s1103_s12, %s13_s12  }
   0x2   : > { %p138_p1 = scmp.lt.s32.totalorder %s1080_s12, 3 }
   0x4   : > { %p139_p2 = pnand %p830_p0, %p138_p1 }
   0x5   : > { %s831_s18 = sshll.u32 (!%p139_p2), %s826_s13, 5 }
   0x6   : > { %142 = sbr.rel (%p139_p2) target bundleno = 288 (0x120), region = 32  ;;  %p163_p3 = scmp.lt.s32.totalorder (!%p139_p2), %s831_s18, 63 }
   0xb   : > { %v211_v0 = vld [vmem:[%s1282_s1 + $0x20] sm:$0x33]  ;;  %vm378_vm0 = vcmask 1041408   ;;  %v1052_v3 = vld [vmem:[%s1282_s1 + $0x14] ss:$8 sps:$4 sm:$0xff]   ;;  %v1082_v4 = vmov 0   ;;  %v214_v25 = vlaneseq }
   0xc   : > { %v856_v1 = vcombine.high %v211_v0, %v211_v0  ;;  %v855_v2 = vcombine.low %v211_v0, %v211_v0  ;;  %417 = vmatprep.mubr.bf16.mxu0 %v1082_v4  ;;  %497 = vmatprep.mubr.bf16.mxu1 %v1082_v4  ;;  %v1054_v6 = vld [vmem:[%s1282_s1 + $0x10] ss:$8 sps:$4 sm:$0xff]   ;;  %s1286_s18 = smov (!%p163_p3, %s831_s18), 63  ;;  %v1055_v7 = vld [vmem:[%s1282_s1 + $0x4] ss:$8 sps:$4 sm:$0xff]   ;;  %vm329_vm1 = vcmask 293888  }
   0xd   : > { %s832_s23 = sshll.u32 %s1286_s18, 2  ;;  %v1057_v8 = vld [vmem:[%s1282_s1] ss:$8 sps:$4 sm:$0xff]   ;;  %v215_v26 = vshrl.u32 %v214_v25, 7 }
   0xe   : > { %857 = vmatprep.subr.msk.bf16.mxu0 %vm378_vm0, %v856_v1  ;;  %1035 = vmatprep.subr.msk.bf16.mxu1 %vm378_vm0, %v856_v1  ;;  %v380_v5 = vsel %vm378_vm0, %v855_v2, 0  ;;  %s1133_s26 = scalar_lea.vmem %s1281_s0, %s832_s23  ;;  %v212_v29 = vld [vmem:[%s1283_s2] sm:$0x3]  ;;  %s1204_s6 = scalar_lea.vmem %s1284_s3, %s832_s23 }
   0xf   : > { %396 = vmatpush1.bf16.msra.mxu0 %v380_v5  ;;  %1038 = vmatpush1.bf16.msra.mxu1 %v380_v5  ;;  %v1058_v9 = vld [vmem:[%s1133_s26] sm:$0xff]   ;;  %v1060_v11 = vld [vmem:[%s1133_s26 + $0x8] sm:$0xff]   ;;  %v1062_v13 = vld [vmem:[%s1133_s26 + $0x10] sm:$0xff]   ;;  %v220_v27 = vsub.s32 1, %v215_v26  ;;  %v216_v28 = vsub.s32 0, %v215_v26 }
  0x10   : > { %397 = vmatprep.subr.bf16.mxu0 %v1052_v3  ;;  %1036 = vmatprep.subr.bf16.mxu1 %v1052_v3  ;;  %v1059_v10 = vld [vmem:[%s1133_s26 + $0x40] sm:$0xff]   ;;  %v1061_v12 = vld [vmem:[%s1133_s26 + $0x48] sm:$0xff]   ;;  %v1063_v14 = vld [vmem:[%s1133_s26 + $0x50] sm:$0xff]  }
  0x11   : > { %v1064_v15 = vld [vmem:[%s1133_s26 + $0x18] sm:$0xff]   ;;  %v1066_v17 = vld [vmem:[%s1133_s26 + $0x20] sm:$0xff]   ;;  %v1068_v19 = vld [vmem:[%s1133_s26 + $0x28] sm:$0xff]   ;;  %v1187_v32 = vrot.slane %v212_v29, %v220_v27  ;;  %v1189_v33 = vrot.slane %v212_v29, %v216_v28 }
  0x12   : > { %v1065_v16 = vld [vmem:[%s1133_s26 + $0x58] sm:$0xff]   ;;  %v1067_v18 = vld [vmem:[%s1133_s26 + $0x60] sm:$0xff]   ;;  %v1069_v20 = vld [vmem:[%s1133_s26 + $0x68] sm:$0xff]  }
  0x13   : > { %398 = vmatpush1.bf16.msra.mxu0 %v1054_v6  ;;  %1039 = vmatpush1.bf16.msra.mxu1 %v1054_v6  ;;  %v1070_v21 = vld [vmem:[%s1133_s26 + $0x30] sm:$0xff]   ;;  %v1072_v23 = vld [vmem:[%s1133_s26 + $0x38] sm:$0xff]  }
  0x14   : > { %399 = vmatprep.subr.bf16.mxu0 %v1055_v7  ;;  %1037 = vmatprep.subr.bf16.mxu1 %v1055_v7  ;;  %v1071_v22 = vld [vmem:[%s1133_s26 + $0x70] sm:$0xff]   ;;  %v1073_v24 = vld [vmem:[%s1133_s26 + $0x78] sm:$0xff]  }
  0x17   : > { %400 = vmatpush1.bf16.msra.mxu0 %v1057_v8  ;;  %1040 = vmatpush1.bf16.msra.mxu1 %v1057_v8 }
  0x1a   : > { %858 = vmatmul.mubr.msk.bf16.vlgmr.msra.gmra.mxu0 %vm329_vm1, %v1058_v9  ;;  %866 = vmatmul.mubr.msk.bf16.vlgmr.msra.gmra.mxu1 %vm329_vm1, %v1059_v10 }
  0x1b   : > { %427 = vmatprep.mubr.bf16.mxu0 %v1082_v4  ;;  %507 = vmatprep.mubr.bf16.mxu1 %v1082_v4 }
  0x22   : > { %859 = vmatmul.mubr.msk.bf16.gmra.mxu0 %vm329_vm1, %v1060_v11  ;;  %867 = vmatmul.mubr.msk.bf16.gmra.mxu1 %vm329_vm1, %v1061_v12 }
  0x23   : > { %437 = vmatprep.mubr.bf16.mxu0 %v1082_v4  ;;  %517 = vmatprep.mubr.bf16.mxu1 %v1082_v4 }
  0x2a   : > { %860 = vmatmul.mubr.msk.bf16.gmra.mxu0 %vm329_vm1, %v1062_v13  ;;  %868 = vmatmul.mubr.msk.bf16.gmra.mxu1 %vm329_vm1, %v1063_v14 }
  0x2b   : > { %447 = vmatprep.mubr.bf16.mxu0 %v1082_v4  ;;  %527 = vmatprep.mubr.bf16.mxu1 %v1082_v4 }
  0x32   : > { %861 = vmatmul.mubr.msk.bf16.gmra.mxu0 %vm329_vm1, %v1064_v15  ;;  %869 = vmatmul.mubr.msk.bf16.gmra.mxu1 %vm329_vm1, %v1065_v16 }
  0x33   : > { %457 = vmatprep.mubr.bf16.mxu0 %v1082_v4  ;;  %537 = vmatprep.mubr.bf16.mxu1 %v1082_v4 }
  0x3a   : > { %862 = vmatmul.mubr.msk.bf16.gmra.mxu0 %vm329_vm1, %v1066_v17  ;;  %870 = vmatmul.mubr.msk.bf16.gmra.mxu1 %vm329_vm1, %v1067_v18 }
  0x3b   : > { %467 = vmatprep.mubr.bf16.mxu0 %v1082_v4  ;;  %547 = vmatprep.mubr.bf16.mxu1 %v1082_v4 }
  0x42   : > { %863 = vmatmul.mubr.msk.bf16.gmra.mxu0 %vm329_vm1, %v1068_v19  ;;  %871 = vmatmul.mubr.msk.bf16.gmra.mxu1 %vm329_vm1, %v1069_v20 }
  0x43   : > { %477 = vmatprep.mubr.bf16.mxu0 %v1082_v4  ;;  %557 = vmatprep.mubr.bf16.mxu1 %v1082_v4 }
  0x4a   : > { %864 = vmatmul.mubr.msk.bf16.gmra.mxu0 %vm329_vm1, %v1070_v21  ;;  %872 = vmatmul.mubr.msk.bf16.gmra.mxu1 %vm329_vm1, %v1071_v22 }
  0x4b   : > { %487 = vmatprep.mubr.bf16.mxu0 %v1082_v4  ;;  %567 = vmatprep.mubr.bf16.mxu1 %v1082_v4 }
  0x52   : > { %865 = vmatmul.mubr.msk.bf16.gmra.mxu0 %vm329_vm1, %v1072_v23  ;;  %873 = vmatmul.mubr.msk.bf16.gmra.mxu1 %vm329_vm1, %v1073_v24 }
  0xda   : > { %v419_v30 = vpop.f32.mrf.mxu0  ;;  %v499_v31 = vpop.f32.mrf.mxu1 }
  0xdb   : > { %v420_v40 = vadd.f32 %v419_v30, %v1189_v33  ;;  %v500_v41 = vadd.f32 %v499_v31, %v1189_v33 }
  0xdc   : > { %v421_v34 = vpop.f32.mrf.mxu0  ;;  %v501_v35 = vpop.f32.mrf.mxu1 }
  0xdd   : > { %v422_v38 = vadd.f32 %v421_v34, %v1187_v32  ;;  %v502_v39 = vadd.f32 %v501_v35, %v1187_v32 }
  0xde   : > { %v423_v36 = vpop.f32.mrf.mxu0  ;;  %v503_v37 = vpop.f32.mrf.mxu1 }
  0xdf   : > { %v424_v44 = vadd.f32 %v423_v36, %v1189_v33  ;;  %v504_v45 = vadd.f32 %v503_v37, %v1189_v33  ;;  %v578_v50 = vmax.f32 %v420_v40, %v422_v38  ;;  %v594_v51 = vmax.f32 %v500_v41, %v502_v39 }
  0xe0   : > { %v425_v42 = vpop.f32.mrf.mxu0  ;;  %v505_v43 = vpop.f32.mrf.mxu1 }
  0xe1   : > { %v426_v46 = vadd.f32 %v425_v42, %v1187_v32  ;;  %v506_v47 = vadd.f32 %v505_v43, %v1187_v32 }
  0xe2   : > { %v429_v48 = vpop.f32.mrf.mxu0  ;;  %v509_v49 = vpop.f32.mrf.mxu1 }
  0xe3   : > { %v579_v52 = vmax.f32 %v424_v44, %v426_v46  ;;  %v595_v53 = vmax.f32 %v504_v45, %v506_v47  ;;  %v430_v62 = vadd.f32 %v429_v48, %v1189_v33  ;;  %v510_v63 = vadd.f32 %v509_v49, %v1189_v33 }
  0xe4   : > { %v431_v54 = vpop.f32.mrf.mxu0  ;;  %v511_v55 = vpop.f32.mrf.mxu1 }
  0xe5   : > { %v943_v56 = vpack.c.bf16 %v579_v52, %v578_v50  ;;  %v983_v57 = vpack.c.bf16 %v595_v53, %v594_v51  ;;  %v432_v60 = vadd.f32 %v431_v54, %v1187_v32  ;;  %v512_v61 = vadd.f32 %v511_v55, %v1187_v32 }
  0xe6   : > { %v433_v58 = vpop.f32.mrf.mxu0  ;;  %v513_v59 = vpop.f32.mrf.mxu1 }
  0xe7   : > { %944 = vst [vmem:[%s1204_s6] sm:$0xff] %v943_v56   ;;  %1027 = vst [vmem:[%s1204_s6 + $0x40] sm:$0xff] %v983_v57   ;;  %v434_v2 = vadd.f32 %v433_v58, %v1189_v33  ;;  %v514_v3 = vadd.f32 %v513_v59, %v1189_v33  ;;  %v580_v8 = vmax.f32 %v430_v62, %v432_v60 }
  0xe8   : > { %v435_v0 = vpop.f32.mrf.mxu0  ;;  %v515_v1 = vpop.f32.mrf.mxu1  ;;  %v596_v9 = vmax.f32 %v510_v63, %v512_v61 }
  0xe9   : > { %v436_v4 = vadd.f32 %v435_v0, %v1187_v32  ;;  %v516_v5 = vadd.f32 %v515_v1, %v1187_v32 }
  0xea   : > { %v439_v6 = vpop.f32.mrf.mxu0  ;;  %v519_v7 = vpop.f32.mrf.mxu1 }
  0xeb   : > { %v581_v10 = vmax.f32 %v434_v2, %v436_v4  ;;  %v597_v11 = vmax.f32 %v514_v3, %v516_v5  ;;  %v440_v20 = vadd.f32 %v439_v6, %v1189_v33  ;;  %v520_v21 = vadd.f32 %v519_v7, %v1189_v33 }
  0xec   : > { %v441_v12 = vpop.f32.mrf.mxu0  ;;  %v521_v13 = vpop.f32.mrf.mxu1 }
  0xed   : > { %v948_v14 = vpack.c.bf16 %v581_v10, %v580_v8  ;;  %v988_v15 = vpack.c.bf16 %v597_v11, %v596_v9  ;;  %v442_v18 = vadd.f32 %v441_v12, %v1187_v32  ;;  %v522_v19 = vadd.f32 %v521_v13, %v1187_v32 }
  0xee   : > { %v443_v16 = vpop.f32.mrf.mxu0  ;;  %v523_v17 = vpop.f32.mrf.mxu1 }
  0xef   : > { %1020 = vst [vmem:[%s1204_s6 + $0x8] sm:$0xff] %v948_v14   ;;  %1028 = vst [vmem:[%s1204_s6 + $0x48] sm:$0xff] %v988_v15   ;;  %v444_v24 = vadd.f32 %v443_v16, %v1189_v33  ;;  %v524_v25 = vadd.f32 %v523_v17, %v1189_v33  ;;  %v582_v30 = vmax.f32 %v440_v20, %v442_v18 }
  0xf0   : > { %v445_v22 = vpop.f32.mrf.mxu0  ;;  %v525_v23 = vpop.f32.mrf.mxu1  ;;  %v598_v31 = vmax.f32 %v520_v21, %v522_v19 }
  0xf1   : > { %v446_v26 = vadd.f32 %v445_v22, %v1187_v32  ;;  %v526_v27 = vadd.f32 %v525_v23, %v1187_v32 }
  0xf2   : > { %v449_v28 = vpop.f32.mrf.mxu0  ;;  %v529_v29 = vpop.f32.mrf.mxu1 }
  0xf3   : > { %v583_v34 = vmax.f32 %v444_v24, %v446_v26  ;;  %v599_v35 = vmax.f32 %v524_v25, %v526_v27  ;;  %v450_v44 = vadd.f32 %v449_v28, %v1189_v33  ;;  %v530_v45 = vadd.f32 %v529_v29, %v1189_v33 }
  0xf4   : > { %v451_v36 = vpop.f32.mrf.mxu0  ;;  %v531_v37 = vpop.f32.mrf.mxu1 }
  0xf5   : > { %v953_v38 = vpack.c.bf16 %v583_v34, %v582_v30  ;;  %v993_v39 = vpack.c.bf16 %v599_v35, %v598_v31  ;;  %v452_v42 = vadd.f32 %v451_v36, %v1187_v32  ;;  %v532_v43 = vadd.f32 %v531_v37, %v1187_v32 }
  0xf6   : > { %v453_v40 = vpop.f32.mrf.mxu0  ;;  %v533_v41 = vpop.f32.mrf.mxu1 }
  0xf7   : > { %1021 = vst [vmem:[%s1204_s6 + $0x10] sm:$0xff] %v953_v38   ;;  %1029 = vst [vmem:[%s1204_s6 + $0x50] sm:$0xff] %v993_v39   ;;  %v454_v48 = vadd.f32 %v453_v40, %v1189_v33  ;;  %v534_v49 = vadd.f32 %v533_v41, %v1189_v33  ;;  %v584_v54 = vmax.f32 %v450_v44, %v452_v42 }
  0xf8   : > { %v455_v46 = vpop.f32.mrf.mxu0  ;;  %v535_v47 = vpop.f32.mrf.mxu1  ;;  %v600_v55 = vmax.f32 %v530_v45, %v532_v43 }
  0xf9   : > { %v456_v50 = vadd.f32 %v455_v46, %v1187_v32  ;;  %v536_v51 = vadd.f32 %v535_v47, %v1187_v32 }
  0xfa   : > { %v459_v52 = vpop.f32.mrf.mxu0  ;;  %v539_v53 = vpop.f32.mrf.mxu1 }
  0xfb   : > { %v585_v56 = vmax.f32 %v454_v48, %v456_v50  ;;  %v601_v57 = vmax.f32 %v534_v49, %v536_v51  ;;  %v460_v2 = vadd.f32 %v459_v52, %v1189_v33  ;;  %v540_v3 = vadd.f32 %v539_v53, %v1189_v33 }
  0xfc   : > { %v461_v58 = vpop.f32.mrf.mxu0  ;;  %v541_v59 = vpop.f32.mrf.mxu1 }
  0xfd   : > { %v958_v60 = vpack.c.bf16 %v585_v56, %v584_v54  ;;  %v998_v61 = vpack.c.bf16 %v601_v57, %v600_v55  ;;  %v462_v0 = vadd.f32 %v461_v58, %v1187_v32  ;;  %v542_v1 = vadd.f32 %v541_v59, %v1187_v32 }
  0xfe   : > { %v463_v62 = vpop.f32.mrf.mxu0  ;;  %v543_v63 = vpop.f32.mrf.mxu1 }
  0xff   : > { %1022 = vst [vmem:[%s1204_s6 + $0x18] sm:$0xff] %v958_v60   ;;  %1030 = vst [vmem:[%s1204_s6 + $0x58] sm:$0xff] %v998_v61   ;;  %v464_v6 = vadd.f32 %v463_v62, %v1189_v33  ;;  %v544_v7 = vadd.f32 %v543_v63, %v1189_v33  ;;  %v586_v12 = vmax.f32 %v460_v2, %v462_v0 }
 0x100   : > { %v465_v4 = vpop.f32.mrf.mxu0  ;;  %v545_v5 = vpop.f32.mrf.mxu1  ;;  %v602_v13 = vmax.f32 %v540_v3, %v542_v1 }
 0x101   : > { %v466_v8 = vadd.f32 %v465_v4, %v1187_v32  ;;  %v546_v9 = vadd.f32 %v545_v5, %v1187_v32 }
 0x102   : > { %v469_v10 = vpop.f32.mrf.mxu0  ;;  %v549_v11 = vpop.f32.mrf.mxu1 }
 0x103   : > { %v587_v14 = vmax.f32 %v464_v6, %v466_v8  ;;  %v603_v15 = vmax.f32 %v544_v7, %v546_v9  ;;  %v470_v24 = vadd.f32 %v469_v10, %v1189_v33  ;;  %v550_v25 = vadd.f32 %v549_v11, %v1189_v33 }
 0x104   : > { %v471_v16 = vpop.f32.mrf.mxu0  ;;  %v551_v17 = vpop.f32.mrf.mxu1 }
 0x105   : > { %v963_v18 = vpack.c.bf16 %v587_v14, %v586_v12  ;;  %v1003_v19 = vpack.c.bf16 %v603_v15, %v602_v13  ;;  %v472_v22 = vadd.f32 %v471_v16, %v1187_v32  ;;  %v552_v23 = vadd.f32 %v551_v17, %v1187_v32 }
 0x106   : > { %v473_v20 = vpop.f32.mrf.mxu0  ;;  %v553_v21 = vpop.f32.mrf.mxu1 }
 0x107   : > { %1023 = vst [vmem:[%s1204_s6 + $0x20] sm:$0xff] %v963_v18   ;;  %1031 = vst [vmem:[%s1204_s6 + $0x60] sm:$0xff] %v1003_v19   ;;  %v474_v28 = vadd.f32 %v473_v20, %v1189_v33  ;;  %v554_v29 = vadd.f32 %v553_v21, %v1189_v33  ;;  %v588_v36 = vmax.f32 %v470_v24, %v472_v22 }
 0x108   : > { %v475_v26 = vpop.f32.mrf.mxu0  ;;  %v555_v27 = vpop.f32.mrf.mxu1  ;;  %v604_v37 = vmax.f32 %v550_v25, %v552_v23 }
 0x109   : > { %v476_v30 = vadd.f32 %v475_v26, %v1187_v32  ;;  %v556_v31 = vadd.f32 %v555_v27, %v1187_v32 }
 0x10a   : > { %v479_v34 = vpop.f32.mrf.mxu0  ;;  %v559_v35 = vpop.f32.mrf.mxu1 }
 0x10b   : > { %v589_v38 = vmax.f32 %v474_v28, %v476_v30  ;;  %v605_v39 = vmax.f32 %v554_v29, %v556_v31  ;;  %v480_v48 = vadd.f32 %v479_v34, %v1189_v33  ;;  %v560_v49 = vadd.f32 %v559_v35, %v1189_v33 }
 0x10c   : > { %v481_v40 = vpop.f32.mrf.mxu0  ;;  %v561_v41 = vpop.f32.mrf.mxu1 }
 0x10d   : > { %v968_v42 = vpack.c.bf16 %v589_v38, %v588_v36  ;;  %v1008_v43 = vpack.c.bf16 %v605_v39, %v604_v37  ;;  %v482_v46 = vadd.f32 %v481_v40, %v1187_v32  ;;  %v562_v47 = vadd.f32 %v561_v41, %v1187_v32 }
 0x10e   : > { %v483_v44 = vpop.f32.mrf.mxu0  ;;  %v563_v45 = vpop.f32.mrf.mxu1 }
 0x10f   : > { %1024 = vst [vmem:[%s1204_s6 + $0x28] sm:$0xff] %v968_v42   ;;  %1032 = vst [vmem:[%s1204_s6 + $0x68] sm:$0xff] %v1008_v43   ;;  %v484_v52 = vadd.f32 %v483_v44, %v1189_v33  ;;  %v564_v53 = vadd.f32 %v563_v45, %v1189_v33  ;;  %v590_v58 = vmax.f32 %v480_v48, %v482_v46 }
 0x110   : > { %v485_v50 = vpop.f32.mrf.mxu0  ;;  %v565_v51 = vpop.f32.mrf.mxu1  ;;  %v606_v59 = vmax.f32 %v560_v49, %v562_v47 }
 0x111   : > { %v486_v54 = vadd.f32 %v485_v50, %v1187_v32  ;;  %v566_v55 = vadd.f32 %v565_v51, %v1187_v32 }
 0x112   : > { %v489_v56 = vpop.f32.mrf.mxu0  ;;  %v569_v57 = vpop.f32.mrf.mxu1 }
 0x113   : > { %v591_v60 = vmax.f32 %v484_v52, %v486_v54  ;;  %v607_v61 = vmax.f32 %v564_v53, %v566_v55  ;;  %v490_v6 = vadd.f32 %v489_v56, %v1189_v33  ;;  %v570_v7 = vadd.f32 %v569_v57, %v1189_v33 }
 0x114   : > { %v491_v62 = vpop.f32.mrf.mxu0  ;;  %v571_v63 = vpop.f32.mrf.mxu1 }
 0x115   : > { %v973_v0 = vpack.c.bf16 %v591_v60, %v590_v58  ;;  %v1013_v1 = vpack.c.bf16 %v607_v61, %v606_v59  ;;  %v492_v4 = vadd.f32 %v491_v62, %v1187_v32  ;;  %v572_v5 = vadd.f32 %v571_v63, %v1187_v32 }
 0x116   : > { %v493_v2 = vpop.f32.mrf.mxu0  ;;  %v573_v3 = vpop.f32.mrf.mxu1 }
 0x117   : > { %1025 = vst [vmem:[%s1204_s6 + $0x30] sm:$0xff] %v973_v0   ;;  %1033 = vst [vmem:[%s1204_s6 + $0x70] sm:$0xff] %v1013_v1   ;;  %v494_v10 = vadd.f32 %v493_v2, %v1189_v33  ;;  %v574_v11 = vadd.f32 %v573_v3, %v1189_v33  ;;  %v592_v14 = vmax.f32 %v490_v6, %v492_v4 }
 0x118   : > { %v495_v8 = vpop.f32.mrf.mxu0  ;;  %v575_v9 = vpop.f32.mrf.mxu1  ;;  %v608_v15 = vmax.f32 %v570_v7, %v572_v5 }
 0x119   : > { %v496_v12 = vadd.f32 %v495_v8, %v1187_v32  ;;  %v576_v13 = vadd.f32 %v575_v9, %v1187_v32 }
 0x11b   : > { %v593_v16 = vmax.f32 %v494_v10, %v496_v12  ;;  %v609_v17 = vmax.f32 %v574_v11, %v576_v13 }
 0x11d   : > { %v978_v18 = vpack.c.bf16 %v593_v16, %v592_v14  ;;  %v1018_v19 = vpack.c.bf16 %v609_v17, %v608_v15 }
 0x11f   : > { %1026 = vst [vmem:[%s1204_s6 + $0x38] sm:$0xff] %v978_v18   ;;  %1034 = vst [vmem:[%s1204_s6 + $0x78] sm:$0xff] %v1018_v19  }
 0x120 PF: > { %s13_s12 = sadd.s32 1, %s1080_s12  }
 0x121   : > { %p10_p4 = scmp.ge.s32.totalorder %s13_s12, 4  }
 0x123   :  { %12 = sbr.rel (!%p10_p4) target bundleno = 1 (0x1), region = 62 }

</bundles_post_ra>
